<compile_context>
chip_gen: v7x
topology: tpu7x:2x2x1
jax: 0.10.0
libtpu: 0.0.40
codegen_flags: <defaults>
</compile_context>

<pallas_src>
import functools

import jax
import jax.numpy as jnp
from jax.experimental import pallas as pl
from jax.experimental.pallas import tpu as pltpu

EPS = 1e-5


def _vmem_limit_bytes():
    """~3/4 of physical VMEM, capped at 96 MiB (v5e/v6e) / 48 MiB (v7x)."""
    cap = 64 << 20
    try:
        cap = int(getattr(pltpu.get_tpu_info(), "vmem_capacity_bytes", cap))
    except Exception:
        pass
    return max(32 << 20, min((cap * 3) // 4, 96 << 20))


def _round_down(x, m):
    return (x // m) * m


def _pick_tile_2d(rows, lanes, itemsize, target_bytes):
    """Pick a legal (rows, lanes) block: each dim is either the full extent or a
    multiple of (8, 128), with block bytes ~<= target_bytes."""
    if rows * lanes * itemsize <= target_bytes:
        return rows, lanes
    # Prefer full rows + lane tiling (lane-dense, long contiguous DMA runs).
    if lanes > 128:
        bl = _round_down(target_bytes // max(1, rows * itemsize), 128)
        bl = min(bl, _round_down(lanes, 128))
        if bl >= 128:
            return rows, bl
    bl = lanes if lanes <= 128 else 128
    if rows > 8:
        br = _round_down(target_bytes // max(1, bl * itemsize), 8)
        br = max(8, min(br, _round_down(rows, 8)))
    else:
        br = rows
    return br, bl


# ----------------------------- kernels ------------------------------------


def _fused_kernel(x_ref, gamma_ref, beta_ref, o_ref, *, inv_m):
    """Whole tensor resident: exact two-pass variance, single HBM read/write."""
    x = x_ref[...].astype(jnp.float32)                                  # (N, C, HW)
    mean = (jnp.sum(jnp.sum(x, axis=0), axis=-1, keepdims=True) * inv_m)[None]
    d = x - mean                                                        # (N, C, HW)
    var = (jnp.sum(jnp.sum(d * d, axis=0), axis=-1, keepdims=True) * inv_m)[None]
    scale = jax.lax.rsqrt(var + EPS) * gamma_ref[...]                   # (1, C, 1)
    o_ref[...] = (d * scale + beta_ref[...]).astype(o_ref.dtype)


def _stats_kernel(x_ref, rsum_ref, rsq_ref, *, lanes, tile):
    """Phase 1: per-row (n*C + c) partial sum / sumsq accumulated in the
    resident output block across the lane-tile ('arbitrary') grid axis."""
    t = pl.program_id(1)
    nt = pl.num_programs(1)

    @pl.when(t == 0)
    def _init():
        rsum_ref[...] = jnp.zeros_like(rsum_ref)
        rsq_ref[...] = jnp.zeros_like(rsq_ref)

    def _accum(x):
        rsum_ref[...] += jnp.sum(x, axis=1, keepdims=True)
        rsq_ref[...] += jnp.sum(x * x, axis=1, keepdims=True)

    if lanes % tile != 0:
        # Ragged last lane tile: mask only there; full tiles stay unmasked.
        @pl.when(t != nt - 1)
        def _full():
            _accum(x_ref[...].astype(jnp.float32))

        @pl.when(t == nt - 1)
        def _last():
            x = x_ref[...].astype(jnp.float32)
            lane = jax.lax.broadcasted_iota(jnp.int32, x.shape, 1)
            _accum(jnp.where(t * tile + lane < lanes, x, 0.0))
    else:
        _accum(x_ref[...].astype(jnp.float32))


def _apply_kernel(x_ref, scale_ref, shift_ref, o_ref):
    """Phase 2: out = x * scale + shift (per-row scale/shift broadcast over lanes)."""
    x = x_ref[...].astype(jnp.float32)
    o_ref[...] = (x * scale_ref[...] + shift_ref[...]).astype(o_ref.dtype)


# ----------------------------- wrapper -------------------------------------


def batchlayer_forward(x, gamma, beta, *, force_streaming=False, max_lane_tile=None):
    """x: (N, C, H, W); gamma, beta: (1, C, 1, 1).  Matches PyTorch Batchlayer.

    force_streaming / max_lane_tile are test/tuning knobs (max_lane_tile, if
    smaller than H*W, must be a multiple of 128)."""
    N, C, H, W = x.shape
    HW = H * W
    R = N * C
    M = N * HW
    inv_m = 1.0 / float(M)
    itemsize = jnp.dtype(x.dtype).itemsize
    limit = _vmem_limit_bytes()

    # ---------- Fused single-pass path for tensors that fit VMEM ----------
    pad_c = -(-C // 8) * 8
    pad_hw = -(-HW // 128) * 128
    padded_elems = N * pad_c * pad_hw
    fused_vmem = padded_elems * (2 * itemsize + 3 * 4)    # in + out + f32 temps
    if not force_streaming and fused_vmem <= limit // 2:
        out3 = pl.pallas_call(
            functools.partial(_fused_kernel, inv_m=inv_m),
            out_shape=jax.ShapeDtypeStruct((N, C, HW), x.dtype),
            compiler_params=pltpu.CompilerParams(vmem_limit_bytes=limit),
        )(x.reshape(N, C, HW),
          gamma.reshape(1, C, 1).astype(jnp.float32),
          beta.reshape(1, C, 1).astype(jnp.float32))
        return out3.reshape(N, C, H, W)

    # ---------- Streaming two-pass path on the (N*C, H*W) view ----------
    x2 = x.reshape(R, HW)                                 # zero-copy

    # Phase 1: stats tiles ~2x apply tiles (only the input is double-buffered).
    # TODO(synk): optionally sweep pipeline_mode=pl.Buffered(3) on the x spec.
    br_s, bl_s = _pick_tile_2d(R, HW, itemsize, min(limit // 3, 16 << 20))
    if max_lane_tile is not None:
        bl_s = min(bl_s, max_lane_tile)
    rsum, rsq = pl.pallas_call(
        functools.partial(_stats_kernel, lanes=HW, tile=bl_s),
        out_shape=(jax.ShapeDtypeStruct((R, 1), jnp.float32),
                   jax.ShapeDtypeStruct((R, 1), jnp.float32)),
        grid=(pl.cdiv(R, br_s), pl.cdiv(HW, bl_s)),
        in_specs=[pl.BlockSpec((br_s, bl_s), lambda i, t: (i, t))],
        out_specs=(pl.BlockSpec((br_s, 1), lambda i, t: (i, 0)),
                   pl.BlockSpec((br_s, 1), lambda i, t: (i, 0))),
        compiler_params=pltpu.CompilerParams(
            dimension_semantics=("parallel", "arbitrary"),
            vmem_limit_bytes=limit),
    )(x2)

    # Tiny O(N*C) fold: partials -> per-channel stats -> per-row scale/shift.
    s = jnp.sum(rsum.reshape(N, C), axis=0)
    sq = jnp.sum(rsq.reshape(N, C), axis=0)
    mean = s * inv_m
    var = jnp.maximum(sq * inv_m - mean * mean, 0.0)      # clamp f32 cancellation
    scale_c = jax.lax.rsqrt(var + EPS) * gamma.reshape(C).astype(jnp.float32)
    shift_c = beta.reshape(C).astype(jnp.float32) - mean * scale_c
    scale = jnp.broadcast_to(scale_c[None, :], (N, C)).reshape(R, 1)
    shift = jnp.broadcast_to(shift_c[None, :], (N, C)).reshape(R, 1)

    # Phase 2: out = x*scale + shift (both axes independent -> megacore).
    br_a, bl_a = _pick_tile_2d(R, HW, itemsize, min(limit // 6, 8 << 20))
    if max_lane_tile is not None:
        bl_a = min(bl_a, max_lane_tile)
    out2 = pl.pallas_call(
        _apply_kernel,
        out_shape=jax.ShapeDtypeStruct((R, HW), x.dtype),
        grid=(pl.cdiv(R, br_a), pl.cdiv(HW, bl_a)),
        in_specs=[pl.BlockSpec((br_a, bl_a), lambda i, t: (i, t)),
                  pl.BlockSpec((br_a, 1), lambda i, t: (i, 0)),
                  pl.BlockSpec((br_a, 1), lambda i, t: (i, 0))],
        out_specs=pl.BlockSpec((br_a, bl_a), lambda i, t: (i, t)),
        compiler_params=pltpu.CompilerParams(
            dimension_semantics=("parallel", "parallel"),
            vmem_limit_bytes=limit),
    )(x2, scale, shift)

    return out2.reshape(N, C, H, W)


def reference_forward(x, gamma, beta):
    mean = jnp.mean(x, axis=(0, 2, 3), keepdims=True)
    a = x - mean
    b = a / jnp.sqrt(jnp.mean(a * a, axis=(0, 2, 3), keepdims=True) + EPS)
    return b * gamma + beta


if __name__ == "__main__":
    key = jax.random.PRNGKey(0)
    kx, kg, kb, kx2 = jax.random.split(key, 4)

    N, C, H, W = 2, 4, 16, 16
    x = jax.random.normal(kx, (N, C, H, W), dtype=jnp.float32)
    # Deterministic parameter init matching uniform_(-0.1, 0.1)
    gamma = jax.random.uniform(kg, (1, C, 1, 1), minval=-0.1, maxval=0.1,
                               dtype=jnp.float32)
    beta = jax.random.uniform(kb, (1, C, 1, 1), minval=-0.1, maxval=0.1,
                              dtype=jnp.float32)

    # Fused path (small tensor: single HBM read + write).
    out = jax.block_until_ready(batchlayer_forward(x, gamma, beta))
    ref = reference_forward(x, gamma, beta)
    assert out.shape == (N, C, H, W)
    assert jnp.allclose(out, ref, atol=1e-5, rtol=1e-5), "fused path mismatch"

    # Streaming two-pass path, including the ragged last-lane-tile branch.
    N2, C2, H2, W2 = 2, 4, 16, 20          # HW = 320 -> 2 full 128-lane tiles + ragged tail
    x2 = jax.random.normal(kx2, (N2, C2, H2, W2), dtype=jnp.float32)
    out2 = jax.block_until_ready(
        batchlayer_forward(x2, gamma, beta, force_streaming=True, max_lane_tile=128))
    ref2 = reference_forward(x2, gamma, beta)
    assert jnp.allclose(out2, ref2, atol=1e-5, rtol=1e-5), "streaming path mismatch"

    print("KERNEL_OK")
</pallas_src>

<mosaic_0001>
module attributes {stable_mosaic.version = 11 : i64} {
  func.func @_fused_kernel(%arg0: memref<2x4x256xf32, #tpu.memory_space<vmem>>, %arg1: memref<1x4x1xf32, #tpu.memory_space<vmem>>, %arg2: memref<1x4x1xf32, #tpu.memory_space<vmem>>, %arg3: memref<2x4x256xf32, #tpu.memory_space<vmem>>) attributes {dimension_semantics = [], scalar_prefetch = 0 : i64, scratch_operands = 0 : i64, tpu.core_type = #tpu.core_type<tc>} {
    %c0 = arith.constant 0 : index
    %c0_0 = arith.constant 0 : index
    %c0_1 = arith.constant 0 : index
    %0 = vector.load %arg0[%c0, %c0_0, %c0_1] : memref<2x4x256xf32, #tpu.memory_space<vmem>>, vector<2x4x256xf32>
    %cst = arith.constant dense<0.000000e+00> : vector<4x256xf32>
    %1 = vector.multi_reduction <add>, %0, %cst [0] : vector<2x4x256xf32> to vector<4x256xf32>
    %cst_2 = arith.constant dense<0.000000e+00> : vector<4xf32>
    %2 = vector.multi_reduction <add>, %1, %cst_2 [1] : vector<4x256xf32> to vector<4xf32>
    %3 = vector.shape_cast %2 : vector<4xf32> to vector<4x1xf32>
    %cst_3 = arith.constant 0.001953125 : f32
    %4 = vector.broadcast %cst_3 : f32 to vector<4x1xf32>
    %5 = arith.mulf %3, %4 : vector<4x1xf32>
    %6 = vector.shape_cast %5 : vector<4x1xf32> to vector<1x4x1xf32>
    %7 = vector.broadcast %6 : vector<1x4x1xf32> to vector<2x4x256xf32>
    %8 = arith.subf %0, %7 : vector<2x4x256xf32>
    %9 = arith.mulf %8, %8 : vector<2x4x256xf32>
    %cst_4 = arith.constant dense<0.000000e+00> : vector<4x256xf32>
    %10 = vector.multi_reduction <add>, %9, %cst_4 [0] : vector<2x4x256xf32> to vector<4x256xf32>
    %cst_5 = arith.constant dense<0.000000e+00> : vector<4xf32>
    %11 = vector.multi_reduction <add>, %10, %cst_5 [1] : vector<4x256xf32> to vector<4xf32>
    %12 = vector.shape_cast %11 : vector<4xf32> to vector<4x1xf32>
    %cst_6 = arith.constant 0.001953125 : f32
    %13 = vector.broadcast %cst_6 : f32 to vector<4x1xf32>
    %14 = arith.mulf %12, %13 : vector<4x1xf32>
    %15 = vector.shape_cast %14 : vector<4x1xf32> to vector<1x4x1xf32>
    %cst_7 = arith.constant 9.99999974E-6 : f32
    %16 = vector.broadcast %cst_7 : f32 to vector<1x4x1xf32>
    %17 = arith.addf %15, %16 : vector<1x4x1xf32>
    %18 = math.rsqrt %17 : vector<1x4x1xf32>
    %c0_8 = arith.constant 0 : index
    %c0_9 = arith.constant 0 : index
    %c0_10 = arith.constant 0 : index
    %19 = vector.load %arg1[%c0_8, %c0_9, %c0_10] : memref<1x4x1xf32, #tpu.memory_space<vmem>>, vector<1x4x1xf32>
    %20 = arith.mulf %18, %19 : vector<1x4x1xf32>
    %21 = vector.broadcast %20 : vector<1x4x1xf32> to vector<2x4x256xf32>
    %22 = arith.mulf %8, %21 : vector<2x4x256xf32>
    %c0_11 = arith.constant 0 : index
    %c0_12 = arith.constant 0 : index
    %c0_13 = arith.constant 0 : index
    %23 = vector.load %arg2[%c0_11, %c0_12, %c0_13] : memref<1x4x1xf32, #tpu.memory_space<vmem>>, vector<1x4x1xf32>
    %24 = vector.broadcast %23 : vector<1x4x1xf32> to vector<2x4x256xf32>
    %25 = arith.addf %22, %24 : vector<2x4x256xf32>
    %c0_14 = arith.constant 0 : index
    %c0_15 = arith.constant 0 : index
    %c0_16 = arith.constant 0 : index
    %26 = vector.load %arg3[%c0_14, %c0_15, %c0_16] : memref<2x4x256xf32, #tpu.memory_space<vmem>>, vector<2x4x256xf32>
    tpu.vector_store %arg3[%c0_14, %c0_15, %c0_16], %25 {strides = array<i32>} : memref<2x4x256xf32, #tpu.memory_space<vmem>>, vector<2x4x256xf32>,
    return
  }
}

</mosaic_0001>

<bundles_post_ra>
// kernel: tpu_custom_call.1
= control target key start
LH: loop header
LB: loop body
LE: loop exit
PB: predicated region body
PF: predicated region fallthrough
CT: control target
= control target key end

     0   :  { %8 = vsyncpa [#allocation3], 0  ;;  %s267_s0 = inlined_call_operand.hbm [shape: f32[2,4,256], index: 0, kind: input, shape index: {}]   ;;  %s268_s1 = inlined_call_operand.vmem [shape: f32[1,4,1], index: 1, kind: input, shape index: {}]   ;;  %s269_s2 = inlined_call_operand.vmem [shape: f32[1,4,1], index: 2, kind: input, shape index: {}]   ;;  %s270_s3 = inlined_call_operand.hbm [shape: f32[2,4,256], index: 3, kind: output, shape index: {}]  }
   0x1   :  { %9 = vsyncpa [#allocation4], 0  ;;  %s193_s12 = smov [#allocation2]   ;;  %s145_s16 = scalar_lea.hbm %s267_s0, 256 }
   0x2   :  { %s15_s13 = sshll.u32 %s193_s12, 4  ;;  %p146_p0 = scmp.ne.s32.totalorder %s267_s0, %s145_s16  ;;  %s16_s13 = int_to_ptr.vmem [resolvable:$true] %s15_s13 }
   0x3   :  { %p149_p1 = scmp.lt.u32.totalorder %s145_s16, %s267_s0 }
   0x5   :  { %p151_p2 = pnand %p149_p1, %p146_p0 }
   0x7   :  { %154 = shalt.err (!%p151_p2)
}
   0x8   :  { %s155_s21 = scalar_lea.vmem %s16_s13, 256  ;;  %p160_p4 = scmp.lt.s32.totalorder %s16_s13, %s16_s13 }
   0x9   :  { %p156_p3 = scmp.ne.s32.totalorder %s16_s13, %s155_s21  ;;  %p161_p5 = scmp.lt.s32.totalorder %s155_s21, %s155_s21 }
   0xb   :  { %p162_p6 = por %p161_p5, %p160_p4 }
   0xd   :  { %p163_p7 = pnand %p162_p6, %p156_p3 }
   0xf   :  { %166 = shalt.err (!%p163_p7)
}
  0x10   :  { %s194_s22 = smov 128   ;;  %s195_s23 = smov 8  }
  0x11   :  { %21 = dma.hbm_to_vmem [thread:$0]  %s267_s0, 256, %s16_s13, [#allocation3], %s194_s22, %s194_s22, %s195_s23  }
  0x12   :  { %189 = dma.done.wait [#allocation3], 256  }
  0x13   :  { %190 = vsyncadd [#allocation3], 4294967040  ;;  %vm37_vm0 = vcmask 1043456   ;;  %v29_v0 = vld [vmem:[#allocation2] sm:$0xff]  ;;  %v30_v1 = vld [vmem:[#allocation2 + $0x8] sm:$0xff]  ;;  %v54_v15 = vlaneseq  ;;  %v197_v37 = vmov 0  }
  0x14   :  { %v33_v2 = vcombine.high %v29_v0, %v29_v0  ;;  %v34_v3 = vcombine.high %v30_v1, %v30_v1  ;;  %v38_v4 = vsel %vm37_vm0, %v29_v0, 0.0  ;;  %v39_v5 = vsel %vm37_vm0, %v30_v1, 0.0  ;;  %139 = vset.pattern.permute.xlu1 %v197_v37  ;;  %140 = vset.pattern.permute.xlu0 %v197_v37  ;;  %v83_v41 = vld [vmem:[%s268_s1] sm:$0xf]  ;;  %s198_s29 = smov [#allocation5]  }
  0x15   :  { %v40_v6 = vadd.f32 %v39_v5, %v38_v4  ;;  %v196_v13 = vmov 839922192   ;;  %v55_v17 = vshrl.u32 %v54_v15, 7  ;;  %v99_v44 = vld [vmem:[%s269_s2] sm:$0xf]  ;;  %s121_s30 = sshll.u32 %s198_s29, 4  ;;  %s122_s30 = int_to_ptr.vmem [resolvable:$true] %s121_s30 }
  0x16   :  { %v41_v7 = vsel %vm37_vm0, %v33_v2, 0.0  ;;  %v42_v8 = vsel %vm37_vm0, %v34_v3, 0.0  ;;  %v52_v14 = vunpack.c.l.s4 %v196_v13  ;;  %s167_s1 = scalar_lea.vmem %s122_s30, 256  ;;  %p172_p9 = scmp.lt.s32.totalorder %s122_s30, %s122_s30 }
  0x17   :  { %v43_v9 = vadd.f32 %v42_v8, %v41_v7  ;;  %v44_v10 = vsel %vm37_vm0, %v40_v6, 0.0  ;;  %p168_p8 = scmp.ne.s32.totalorder %s122_s30, %s167_s1  ;;  %p173_p10 = scmp.lt.s32.totalorder %s167_s1, %s167_s1 }
  0x18   :  { %v53_v16 = vunpack.c.0.s8 %v52_v14 }
  0x19   :  { %v45_v11 = vsel %vm37_vm0, %v43_v9, 0.0  ;;  %p174_p11 = por %p173_p10, %p172_p9 }
  0x1a   :  { %v46_v12 = vadd.f32 %v45_v11, %v44_v10  ;;  %v56_v18 = vsub.s32 %v53_v16, %v55_v17 }
  0x1b   :  { %p175_p12 = pnand %p174_p11, %p168_p8 }
  0x1c   :  { %47 = vadd.xlane.f32.xlu0 %v46_v12 }
  0xa9   :  { %v48_v19 = vpop.xlane.xlu0 %47 }
  0xaa   :  { %v49_v20 = vmul.f32 0.001953125, %v48_v19 }
  0xac   :  { %v57_v21 = vrot.slane %v49_v20, %v56_v18 }
  0xae   :  { %v59_v22 = vsub.f32 %v29_v0, %v57_v21  ;;  %v60_v23 = vsub.f32 %v30_v1, %v57_v21 }
  0xb0   :  { %v61_v24 = vmul.f32 %v59_v22, %v59_v22  ;;  %v62_v25 = vmul.f32 %v60_v23, %v60_v23 }
  0xb2   :  { %v65_v26 = vcombine.high %v61_v24, %v61_v24  ;;  %v66_v27 = vcombine.high %v62_v25, %v62_v25  ;;  %v69_v28 = vsel %vm37_vm0, %v61_v24, 0.0  ;;  %v70_v29 = vsel %vm37_vm0, %v62_v25, 0.0 }
  0xb3   :  { %v71_v30 = vadd.f32 %v70_v29, %v69_v28 }
  0xb4   :  { %v72_v31 = vsel %vm37_vm0, %v65_v26, 0.0  ;;  %v73_v32 = vsel %vm37_vm0, %v66_v27, 0.0 }
  0xb5   :  { %v74_v33 = vadd.f32 %v73_v32, %v72_v31  ;;  %v75_v34 = vsel %vm37_vm0, %v71_v30, 0.0 }
  0xb7   :  { %v76_v35 = vsel %vm37_vm0, %v74_v33, 0.0 }
  0xb8   :  { %v77_v36 = vadd.f32 %v76_v35, %v75_v34 }
  0xba   :  { %78 = vadd.xlane.f32.xlu0 %v77_v36 }
 0x147   :  { %v79_v38 = vpop.xlane.xlu0 %78 }
 0x148   :  { %v80_v39 = vmul.f32 0.001953125, %v79_v38 }
 0x14a   :  { %v81_v40 = vadd.f32 1e-05, %v80_v39 }
 0x14c   :  { %143 = vrsqrt.f32 %v81_v40 }
 0x156   :  { %v144_v42 = vpop.eup %143 }
 0x157   :  { %v84_v43 = vmul.f32 %v144_v42, %v83_v41 }
 0x159   :  { %87 = vperm.xlu1 %139, %v84_v43  }
 0x15d   :  { %102 = vperm.xlu1 %139, %v99_v44  }
 0x1d8   :  { %v88_v45 = vpop.permute.xlu1 %87 }
 0x1d9   :  { %v95_v46 = vrot.slane %v88_v45, %v56_v18 }
 0x1db   :  { %v97_v48 = vmul.f32 %v95_v46, %v59_v22  ;;  %v98_v49 = vmul.f32 %v95_v46, %v60_v23 }
 0x1dc   :  { %v103_v47 = vpop.permute.xlu1 %102 }
 0x1dd   :  { %v110_v50 = vrot.slane %v103_v47, %v56_v18 }
 0x1df   :  { %v112_v51 = vadd.f32 %v110_v50, %v97_v48  ;;  %v113_v52 = vadd.f32 %v110_v50, %v98_v49 }
 0x1e1   :  { %114 = vst [vmem:[#allocation5] sm:$0xff] %v112_v51  ;;  %115 = vst [vmem:[#allocation5 + $0x8] sm:$0xff] %v113_v52 }
 0x1e2   :  { %178 = shalt.err (!%p175_p12)
}
 0x1e3   :  { %s179_s5 = scalar_lea.hbm %s270_s3, 256 }
 0x1e4   :  { %p180_p13 = scmp.ne.s32.totalorder %s270_s3, %s179_s5  ;;  %p183_p0 = scmp.lt.u32.totalorder %s179_s5, %s270_s3 }
 0x1e6   :  { %p185_p1 = pnand %p183_p0, %p180_p13 }
 0x1e8   :  { %188 = shalt.err (!%p185_p1)
}
 0x1e9   :  { %127 = dma.vmem_to_hbm [thread:$0]  %s122_s30, 256, %s270_s3, [#allocation4], %s194_s22, %s194_s22, %s195_s23  }
 0x1ea   :  { %191 = dma.done.wait [#allocation4], 256  }
 0x1eb   :  { %192 = vsyncadd [#allocation4], 4294967040 }
 0x1ec   :  { %131 = vsyncpa [#allocation3], 1 }
 0x1ed   :  { %132 = vsyncpa [#allocation4], 1 }

</bundles_post_ra>
